<compile_context>
chip_gen: v5e
topology: v5e:2x2
jax: 0.10.0
libtpu: 0.0.40
codegen_flags: <defaults>
</compile_context>

<pallas_src>
import jax
import jax.numpy as jnp
from jax.experimental import pallas as pl
from jax.experimental.pallas import tpu as pltpu


def _round_up(a, b):
    return (a + b - 1) // b * b


def _polyphase_deconv_kernel(x_ref, h_ref, w_ref, b_ref, o_ref, xwin_ref, acc_ref):
    # x_ref   : (1, M_TILE, C_in)      main input rows for this time tile
    # h_ref   : (1, 1, H_pad, C_in)    halo = first J-1 rows of the next tile's input
    # w_ref   : (J, C_in, NP_pad)      polyphase-packed, lane-dense weights
    # b_ref   : (1, NP_pad)            phase-tiled bias (f32)
    # o_ref   : (1, M_TILE, NP_pad)    packed output: [m, p*C_out + o] = y[o, m*s + p]
    # xwin_ref: (M_TILE + H_pad, C_in) VMEM window scratch (main tile + halo)
    # acc_ref : (M_TILE, NP_pad) f32   VMEM accumulator
    J = w_ref.shape[0]
    H = J - 1                      # halo rows actually used
    M = o_ref.shape[1]

    if H > 0:
        # Assemble the (M + H)-row window once; taps read shifted slices of it.
        xwin_ref[0:M, :] = x_ref[0]
        xwin_ref[M:M + H, :] = h_ref[0, 0]
        acc_ref[...] = jnp.dot(xwin_ref[H:H + M, :], w_ref[0],
                               preferred_element_type=jnp.float32)
        for j in range(1, J):      # static, unrolled; each tap is one MXU matmul
            acc_ref[...] += jnp.dot(xwin_ref[H - j:H - j + M, :], w_ref[j],
                                    preferred_element_type=jnp.float32)
    else:
        # Single tap (K <= stride): no halo, no window copy needed.
        acc_ref[...] = jnp.dot(x_ref[0], w_ref[0],
                               preferred_element_type=jnp.float32)

    o_ref[0] = (acc_ref[...] + b_ref[...]).astype(o_ref.dtype)


def causal_conv1d_transpose(x, weight, bias, stride, *, max_time_tile=512,
                            vmem_budget_bytes=48 * 1024 * 1024,
                            compute_dtype=None):
    """x: (B, C_in, T_in), weight: (C_in, C_out, K) (PyTorch ConvTranspose1d layout),
    bias: (C_out,) or None. Returns (B, C_out, T_out)."""
    B, C_in, T_in = x.shape
    wc_in, C_out, K = weight.shape
    assert wc_in == C_in
    s = int(stride)

    T_full = (T_in - 1) * s + K
    T_out = T_full - s
    J = -(-K // s)                     # polyphase taps = ceil(K / stride)
    H = J - 1                          # halo rows needed per time tile
    H_pad = max(H, 1)                  # keep halo arrays non-empty
    M_req = -(-T_out // s)             # output rows (per phase) actually needed

    out_dtype = x.dtype
    if compute_dtype is not None:      # e.g. jnp.bfloat16 (f32 accumulation is kept)
        x = x.astype(compute_dtype)
        weight = weight.astype(compute_dtype)
    isz = jnp.dtype(x.dtype).itemsize
    osz = jnp.dtype(out_dtype).itemsize

    NP = s * C_out
    NP_pad = _round_up(NP, 128)        # lane-dense output (unmasked vst)

    # --- time-tile size: multiple of 8 sublanes, capped, and fit a VMEM budget ----
    def vmem_bytes(m_tile):
        inp = 2 * (m_tile * C_in + H_pad * C_in) * isz            # x + halo, double-buffered
        wgt = 2 * J * C_in * NP_pad * isz + 2 * NP_pad * 4        # resident weights + bias
        out = 2 * m_tile * NP_pad * osz                           # output, double-buffered
        scr = (m_tile + H_pad) * C_in * isz + m_tile * NP_pad * 4 # window + f32 accumulator
        return inp + wgt + out + scr

    m_min = max(8, _round_up(H_pad, 8))
    M_TILE = max(m_min, min(max_time_tile, _round_up(max(M_req, 8), 8)))
    while M_TILE > m_min and vmem_bytes(M_TILE) > vmem_budget_bytes:
        M_TILE = max(m_min, _round_up(M_TILE // 2, 8))
    n_t = -(-M_req // M_TILE)
    M_pad = n_t * M_TILE
    vmem_limit = int(min(max(vmem_bytes(M_TILE) + (4 << 20), 32 << 20), 64 << 20))

    # ---- wrapper glue (plain JAX): layout + causal pad only; NO zero-upsample ----
    xt = jnp.transpose(x, (0, 2, 1))                       # (B, T_in, C_in)
    Tp = (n_t + 1) * M_TILE                                # left pad H + right pad to tiles
    xpad = jnp.pad(xt, ((0, 0), (H, Tp - T_in - H), (0, 0)))
    # halo[b, t] = xpad[b, (t+1)*M_TILE : (t+1)*M_TILE + H_pad]  (first rows of next tile)
    halo = xpad.reshape(B, n_t + 1, M_TILE, C_in)[:, 1:, :H_pad, :]

    # Polyphase, lane-dense weight packing:
    #   wpack[j, c, p*C_out + o] = W[c, o, j*s + p]   (zero for j*s + p >= K)
    w_k = jnp.pad(weight, ((0, 0), (0, 0), (0, J * s - K)))
    wpack = jnp.transpose(w_k.reshape(C_in, C_out, J, s), (2, 0, 3, 1)).reshape(J, C_in, NP)
    wpack = jnp.pad(wpack, ((0, 0), (0, 0), (0, NP_pad - NP)))

    if bias is None:
        bias = jnp.zeros((C_out,), jnp.float32)
    bpack = jnp.pad(jnp.tile(bias.astype(jnp.float32), s), (0, NP_pad - NP)).reshape(1, NP_pad)

    cost = pl.CostEstimate(
        flops=int(2 * B * n_t * M_TILE * C_in * NP_pad * J),
        transcendentals=0,
        bytes_accessed=int(B * n_t * (M_TILE + H_pad) * C_in * isz
                           + J * C_in * NP_pad * isz
                           + B * M_pad * NP_pad * osz))

    out = pl.pallas_call(
        _polyphase_deconv_kernel,
        out_shape=jax.ShapeDtypeStruct((B, M_pad, NP_pad), out_dtype),
        grid=(B, n_t),
        in_specs=[
            pl.BlockSpec((1, M_TILE, C_in), lambda b, t: (b, t, 0)),
            pl.BlockSpec((1, 1, H_pad, C_in), lambda b, t: (b, t, 0, 0)),
            pl.BlockSpec((J, C_in, NP_pad), lambda b, t: (0, 0, 0)),
            pl.BlockSpec((1, NP_pad), lambda b, t: (0, 0)),
        ],
        out_specs=pl.BlockSpec((1, M_TILE, NP_pad), lambda b, t: (b, t, 0)),
        scratch_shapes=[
            pltpu.VMEM((M_TILE + H_pad, C_in), xpad.dtype),   # input window (tile + halo)
            pltpu.VMEM((M_TILE, NP_pad), jnp.float32),        # f32 accumulator
        ],
        compiler_params=pltpu.CompilerParams(
            dimension_semantics=("parallel", "parallel"),
            vmem_limit_bytes=vmem_limit),
        cost_estimate=cost,
    )(xpad, halo, wpack, bpack)

    # Unpack phases: out[b, m, p*C_out + o] -> y[b, o, m*s + p], then crop to T_out.
    y = out[:, :, :NP].reshape(B, M_pad, s, C_out)
    y = jnp.transpose(y, (0, 3, 1, 2)).reshape(B, C_out, M_pad * s)
    return y[:, :, :T_out]


def _reference_causal_conv1d_transpose(x, weight, bias, stride):
    """Naive plain-JAX reference matching nn.ConvTranspose1d + [:, :, :-stride]."""
    B, C_in, T_in = x.shape
    _, C_out, K = weight.shape
    T_full = (T_in - 1) * stride + K
    y = jnp.zeros((B, C_out, T_full), jnp.float32) + bias[None, :, None]
    for i in range(T_in):
        for k in range(K):
            contrib = jnp.einsum("bc,co->bo", x[:, :, i], weight[:, :, k])
            y = y.at[:, :, i * stride + k].add(contrib)
    return y[:, :, :-stride]


if __name__ == "__main__":
    key = jax.random.PRNGKey(0)

    configs = [
        # (B, C_in, C_out, T_in, K, stride)
        (2, 4, 6, 8, 4, 2),    # typical K = 2*stride upsampler
        (2, 4, 6, 8, 5, 3),    # K not a multiple of stride (exercises zero-padded tap)
        (2, 4, 6, 8, 3, 1),    # stride 1 (multi-tap halo)
        (2, 4, 6, 8, 2, 4),    # K < stride (single-tap / no-halo path)
    ]

    for (B, C_in, C_out, T_in, K, stride) in configs:
        key, k1, k2, k3 = jax.random.split(key, 4)
        x = jax.random.normal(k1, (B, C_in, T_in), jnp.float32)
        weight = jax.random.normal(k2, (C_in, C_out, K), jnp.float32) * 0.1
        bias = jax.random.normal(k3, (C_out,), jnp.float32) * 0.1

        out = causal_conv1d_transpose(x, weight, bias, stride)
        out = jax.block_until_ready(out)

        T_out = (T_in - 1) * stride + K - stride
        assert out.shape == (B, C_out, T_out), (out.shape, (B, C_out, T_out))

        ref = _reference_causal_conv1d_transpose(x, weight, bias, stride)
        err = float(jnp.max(jnp.abs(out - ref)))
        assert jnp.allclose(out, ref, atol=1e-4, rtol=1e-4), err

    print("KERNEL_OK")
</pallas_src>

<mosaic_0001>
module attributes {stable_mosaic.version = 11 : i64} {
  func.func @_polyphase_deconv_kernel(%arg0: i32, %arg1: i32, %arg2: memref<1x8x4xf32, #tpu.memory_space<vmem>>, %arg3: memref<1x1x1x4xf32, #tpu.memory_space<vmem>>, %arg4: memref<2x4x128xf32, #tpu.memory_space<vmem>>, %arg5: memref<1x128xf32, #tpu.memory_space<vmem>>, %arg6: memref<1x8x128xf32, #tpu.memory_space<vmem>>, %arg7: memref<9x4xf32, #tpu.memory_space<vmem>>, %arg8: memref<8x128xf32, #tpu.memory_space<vmem>>) attributes {dimension_semantics = [#tpu.dimension_semantics<parallel>, #tpu.dimension_semantics<parallel>], iteration_bounds = array<i64: 2, 1>, scalar_prefetch = 0 : i64, scratch_operands = 2 : i64, tpu.core_type = #tpu.core_type<tc>, window_params = [{transform_indices = @transform_0, window_bounds = array<i64: 1, 8, 4>}, {transform_indices = @transform_1, window_bounds = array<i64: 1, 1, 1, 4>}, {pipeline_mode = #tpu.pipeline_mode<synchronous>, transform_indices = @transform_2, window_bounds = array<i64: 2, 4, 128>}, {pipeline_mode = #tpu.pipeline_mode<synchronous>, transform_indices = @transform_3, window_bounds = array<i64: 1, 128>}, {transform_indices = @transform_4, window_bounds = array<i64: 1, 8, 128>}]} {
    %c0 = arith.constant 0 : index
    %c0_0 = arith.constant 0 : index
    %c0_1 = arith.constant 0 : index
    %0 = vector.load %arg2[%c0, %c0_0, %c0_1] : memref<1x8x4xf32, #tpu.memory_space<vmem>>, vector<1x8x4xf32>
    %1 = vector.shape_cast %0 : vector<1x8x4xf32> to vector<8x4xf32>
    %c0_2 = arith.constant 0 : index
    %c0_3 = arith.constant 0 : index
    %2 = vector.load %arg7[%c0_2, %c0_3] : memref<9x4xf32, #tpu.memory_space<vmem>>, vector<8x4xf32>
    tpu.vector_store %arg7[%c0_2, %c0_3], %1 {strides = array<i32>} : memref<9x4xf32, #tpu.memory_space<vmem>>, vector<8x4xf32>,
    %c0_4 = arith.constant 0 : index
    %c0_5 = arith.constant 0 : index
    %c0_6 = arith.constant 0 : index
    %c0_7 = arith.constant 0 : index
    %3 = vector.load %arg3[%c0_4, %c0_5, %c0_6, %c0_7] : memref<1x1x1x4xf32, #tpu.memory_space<vmem>>, vector<1x1x1x4xf32>
    %4 = vector.shape_cast %3 : vector<1x1x1x4xf32> to vector<1x4xf32>
    %c8 = arith.constant 8 : index
    %c0_8 = arith.constant 0 : index
    %5 = vector.load %arg7[%c8, %c0_8] : memref<9x4xf32, #tpu.memory_space<vmem>>, vector<1x4xf32>
    tpu.vector_store %arg7[%c8, %c0_8], %4 {strides = array<i32>} : memref<9x4xf32, #tpu.memory_space<vmem>>, vector<1x4xf32>,
    %c1 = arith.constant 1 : index
    %c0_9 = arith.constant 0 : index
    %6 = vector.load %arg7[%c1, %c0_9] : memref<9x4xf32, #tpu.memory_space<vmem>>, vector<8x4xf32>
    %c0_10 = arith.constant 0 : index
    %c0_11 = arith.constant 0 : index
    %c0_12 = arith.constant 0 : index
    %7 = vector.load %arg4[%c0_10, %c0_11, %c0_12] : memref<2x4x128xf32, #tpu.memory_space<vmem>>, vector<1x4x128xf32>
    %8 = vector.shape_cast %7 : vector<1x4x128xf32> to vector<4x128xf32>
    %cst = arith.constant dense<0.000000e+00> : vector<8x128xf32>
    %9 = tpu.matmul %6, %8, %cst {dimension_numbers = #tpu.dot_dimension_numbers<[1], [0], [0], [1], [0, 0, 1, 1], [], []>} : vector<8x4xf32>, vector<4x128xf32>, vector<8x128xf32> -> vector<8x128xf32>
    %c0_13 = arith.constant 0 : index
    %c0_14 = arith.constant 0 : index
    %10 = vector.load %arg8[%c0_13, %c0_14] : memref<8x128xf32, #tpu.memory_space<vmem>>, vector<8x128xf32>
    tpu.vector_store %arg8[%c0_13, %c0_14], %9 {strides = array<i32>} : memref<8x128xf32, #tpu.memory_space<vmem>>, vector<8x128xf32>,
    %c0_15 = arith.constant 0 : index
    %c0_16 = arith.constant 0 : index
    %11 = vector.load %arg8[%c0_15, %c0_16] : memref<8x128xf32, #tpu.memory_space<vmem>>, vector<8x128xf32>
    %c0_17 = arith.constant 0 : index
    %c0_18 = arith.constant 0 : index
    %12 = vector.load %arg7[%c0_17, %c0_18] : memref<9x4xf32, #tpu.memory_space<vmem>>, vector<8x4xf32>
    %c1_19 = arith.constant 1 : index
    %c0_20 = arith.constant 0 : index
    %c0_21 = arith.constant 0 : index
    %13 = vector.load %arg4[%c1_19, %c0_20, %c0_21] : memref<2x4x128xf32, #tpu.memory_space<vmem>>, vector<1x4x128xf32>
    %14 = vector.shape_cast %13 : vector<1x4x128xf32> to vector<4x128xf32>
    %cst_22 = arith.constant dense<0.000000e+00> : vector<8x128xf32>
    %15 = tpu.matmul %12, %14, %cst_22 {dimension_numbers = #tpu.dot_dimension_numbers<[1], [0], [0], [1], [0, 0, 1, 1], [], []>} : vector<8x4xf32>, vector<4x128xf32>, vector<8x128xf32> -> vector<8x128xf32>
    %16 = arith.addf %11, %15 : vector<8x128xf32>
    %c0_23 = arith.constant 0 : index
    %c0_24 = arith.constant 0 : index
    %17 = vector.load %arg8[%c0_23, %c0_24] : memref<8x128xf32, #tpu.memory_space<vmem>>, vector<8x128xf32>
    tpu.vector_store %arg8[%c0_23, %c0_24], %16 {strides = array<i32>} : memref<8x128xf32, #tpu.memory_space<vmem>>, vector<8x128xf32>,
    %c0_25 = arith.constant 0 : index
    %c0_26 = arith.constant 0 : index
    %18 = vector.load %arg8[%c0_25, %c0_26] : memref<8x128xf32, #tpu.memory_space<vmem>>, vector<8x128xf32>
    %c0_27 = arith.constant 0 : index
    %c0_28 = arith.constant 0 : index
    %19 = vector.load %arg5[%c0_27, %c0_28] : memref<1x128xf32, #tpu.memory_space<vmem>>, vector<1x128xf32>
    %20 = vector.broadcast %19 : vector<1x128xf32> to vector<8x128xf32>
    %21 = arith.addf %18, %20 : vector<8x128xf32>
    %c0_29 = arith.constant 0 : index
    %c0_30 = arith.constant 0 : index
    %c0_31 = arith.constant 0 : index
    %22 = vector.load %arg6[%c0_29, %c0_30, %c0_31] : memref<1x8x128xf32, #tpu.memory_space<vmem>>, vector<1x8x128xf32>
    %23 = vector.shape_cast %22 : vector<1x8x128xf32> to vector<8x128xf32>
    %24 = vector.shape_cast %21 : vector<8x128xf32> to vector<1x8x128xf32>
    tpu.vector_store %arg6[%c0_29, %c0_30, %c0_31], %24 {strides = array<i32>} : memref<1x8x128xf32, #tpu.memory_space<vmem>>, vector<1x8x128xf32>,
    return
  }
  func.func @transform_0(%arg0: i32, %arg1: i32) -> (i32, i32, i32) {
    %c0_i32 = arith.constant 0 : i32
    %c0_i32_0 = arith.constant 0 : i32
    return %arg0, %arg1, %c0_i32 : i32, i32, i32
  }
  func.func @transform_1(%arg0: i32, %arg1: i32) -> (i32, i32, i32, i32) {
    %c0_i32 = arith.constant 0 : i32
    %c0_i32_0 = arith.constant 0 : i32
    %c0_i32_1 = arith.constant 0 : i32
    return %arg0, %arg1, %c0_i32, %c0_i32_0 : i32, i32, i32, i32
  }
  func.func @transform_2(%arg0: i32, %arg1: i32) -> (i32, i32, i32) {
    %c0_i32 = arith.constant 0 : i32
    %c0_i32_0 = arith.constant 0 : i32
    %c0_i32_1 = arith.constant 0 : i32
    %c0_i32_2 = arith.constant 0 : i32
    return %c0_i32, %c0_i32_0, %c0_i32_1 : i32, i32, i32
  }
  func.func @transform_3(%arg0: i32, %arg1: i32) -> (i32, i32) {
    %c0_i32 = arith.constant 0 : i32
    %c0_i32_0 = arith.constant 0 : i32
    %c0_i32_1 = arith.constant 0 : i32
    return %c0_i32, %c0_i32_0 : i32, i32
  }
  func.func @transform_4(%arg0: i32, %arg1: i32) -> (i32, i32, i32) {
    %c0_i32 = arith.constant 0 : i32
    %c0_i32_0 = arith.constant 0 : i32
    return %arg0, %arg1, %c0_i32 : i32, i32, i32
  }
}

</mosaic_0001>

<bundles_post_ra>
// kernel: tpu_custom_call.1
= control target key start
LH: loop header
LB: loop body
LE: loop exit
PB: predicated region body
PF: predicated region fallthrough
CT: control target
= control target key end

     0   :  { %9 = vsyncpa [#allocation5], 0  ;;  %s712_s0 = inlined_call_operand.vmem [shape: f32[2,16,4], index: 0, kind: input, shape index: {}]   ;;  %s713_s1 = inlined_call_operand.vmem [shape: f32[2,1,1,4], index: 1, kind: input, shape index: {}]   ;;  %s714_s2 = inlined_call_operand.vmem [shape: f32[2,4,128], index: 2, kind: input, shape index: {}]   ;;  %s715_s3 = inlined_call_operand.vmem [shape: f32[1,128], index: 3, kind: input, shape index: {}]   ;;  %s716_s4 = inlined_call_operand.hbm [shape: f32[2,8,128], index: 4, kind: output, shape index: {}]  }
   0x1   :  { %11 = vsyncpa [#allocation5 + $0x1], 0  ;;  %s603_s15 = smov 0   ;;  %s605_s16 = smov 0  }
   0x2   :  { %s607_s17 = smov 0   ;;  %s609_s18 = smov 0  }
   0x3   :  { %s611_s19 = smov 0   ;;  %s613_s20 = smov 0  }
   0x4 LB: > { %s424_s21 = sadd.s32 4294967295, %s576_s20   ;;  %s425_s22 = sadd.s32 4294967294, %s576_s20   ;;  %s576_s20 = sphi %s613_s20, %s17_s20   ;;  %s572_s19 = sphi %s611_s19, %s723_s19   ;;  %s568_s18 = sphi %s609_s18, %s722_s18   ;;  %s564_s17 = sphi %s607_s17, %s721_s17   ;;  %s560_s16 = sphi %s605_s16, %s720_s16   ;;  %s556_s15 = sphi %s603_s15, %s719_s15  }
   0x5   : > { %s29_s23 = sadd.s32 1, %s572_s19  ;;  %s136_s24 = sadd.s32 1, %s564_s17 }
   0x6   : > { %p31_p0 = scmp.ge.s32.totalorder %s29_s23, 2  ;;  %p146_p1 = scmp.ne.s32.totalorder %s564_s17, %s560_s16 }
   0x7   : > { %p147_p2 = scmp.eq.s32.totalorder %s424_s21, 1  ;;  %p152_p3 = scmp.ne.s32.totalorder %s560_s16, %s556_s15 }
   0x8   : > { %s725_s23 = smov (%p31_p0, %s29_s23), 0  ;;  %p153_p5 = scmp.eq.s32.totalorder %s425_s22, 1 }
   0x9   : > { %p643_p4 = por %p147_p2, %p146_p1  ;;  %s131_s26 = ssub.s32 %s572_s19, %s725_s23 }
   0xa   : > { %p428_p6 = scmp.ge.s32.totalorder %s576_s20, 1  ;;  %p134_p7 = scmp.eq.s32.totalorder %s131_s26, 0 }
   0xb   : > { %p650_p8 = por %p153_p5, %p152_p3  ;;  %p197_p9 = scmp.lt.s32.totalorder %s576_s20, 3 }
   0xc   : > { %s656_s28 = scalar_select %p134_p7, %s564_s17, %s136_s24  }
   0xd   : > { %p198_p10 = pnand %p428_p6, %p197_p9 }
   0xe   : > { %p232_p11 = scmp.lt.s32.totalorder (!%p198_p10), %s568_s18, 1  ;;  %s229_s21 = sand.u32 (!%p198_p10), 1, %s560_s16  }
   0xf   : > { %201 = sbr.rel (%p198_p10) target bundleno = 167 (0xa7), region = 36  ;;  %s429_s22 = sshll.u32 (!%p198_p10), %s229_s21, 3 }
  0x10   : > { %s438_s24 = sshll.u32 (!%p198_p10), %s568_s18, 3 }
  0x11   : > { %s333_s30 = scalar_lea.hbm (!%p198_p10), %s716_s4, %s438_s24 }
  0x12   : > { %s337_s9 = sshll.u32 (!%p198_p10), %s333_s30, 4  ;;  %s338_s9 = int_to_ptr.hbm [resolvable:$true] %s337_s9 }
  0x13   : > { %s512_s10 = sshra.s32 (!%p198_p10), %s338_s9, 4  ;;  %s513_s10 = int_to_ptr.hbm [resolvable:$true] %s512_s10 }
  0x14   : > { %v253_v0 = vld [vmem:[%s714_s2] sm:$0xf]  ;;  %vm257_vm0 = vcmask 1043456   ;;  %v434_v1 = vld [vmem:[%s714_s2 + $0x4] sm:$0xf]  ;;  %s233_s7 = scalar_select %p232_p11, %s568_s18, 1 }
  0x15   : > { %432 = vmatpush.msk.msra.mxu0 %vm257_vm0, %v253_v0  ;;  %435 = vmatpush.msk.msra.mxu1 %vm257_vm0, %v434_v1  ;;  %vm250_vm1 = vcmask 24576   ;;  %vm247_vm2 = vcmask 31744   ;;  %v497_v6 = vld [vmem:[%s715_s3] ss:$0 sm:$0xff]  ;;  %s322_s18 = scalar_lea.sflag [#allocation5], %s229_s21  ;;  %p519_p1 = scmp.lt.s32.totalorder %s513_s10, %s716_s4 }
  0x16   : > { %s441_s8 = sshll.u32 %s233_s7, 4  ;;  %s245_s11 = scalar_lea.vmem %s713_s1, %s233_s7 }
  0x17   : > { %s239_s14 = scalar_lea.vmem %s712_s0, %s441_s8  ;;  %v249_v2 = vld [vmem:[%s245_s11] sm:$0x1]  ;;  %s231_s7 = scalar_lea.vmem [#allocation4], %s429_s22 }
  0x18   : > { %v246_v3 = vld [vmem:[%s239_s14] sm:$0xff]  ;;  %251 = vst.msk [vmem:[#allocation2 + $0x8] sm:$0x1] %vm250_vm1, %v249_v2  ;;  %s335_s8 = sshll.u32 %s231_s7, 4  ;;  %s514_s11 = scalar_lea.hbm %s513_s10, 8  ;;  %s336_s8 = int_to_ptr.vmem [resolvable:$true] %s335_s8 }
  0x19   : > { %248 = vst.msk [vmem:[#allocation2] sm:$0xff] %vm247_vm2, %v246_v3  ;;  %p515_p12 = scmp.ne.s32.totalorder %s513_s10, %s514_s11  ;;  %s518_s14 = scalar_lea.hbm %s716_s4, 16 }
  0x1a   : > { %p520_p2 = scmp.lt.s32.totalorder %s518_s14, %s514_s11 }
  0x1b   : > { %p516_p13 = pnand %p515_p12, %p643_p4 }
  0x1c   : > { %p521_p3 = por %p520_p2, %p519_p1 }
  0x1d   : > { %p517_p0 = pneg %p516_p13 }
  0x1f   : > { %p522_p5 = pnand %p521_p3, %p517_p0 }
  0x20   : > { %v252_v4 = vld [vmem:[#allocation2 + $0x1] sm:$0xff] }
  0x21   : > { %v283_v5 = vld [vmem:[#allocation2] sm:$0xff]  ;;  %433 = vmatmul.msk.f32.vlgmr.msra.gmra.mxu0 %vm247_vm2, %v252_v4 }
  0x22   : > { %436 = vmatmul.msk.f32.vlgmr.msra.gmra.mxu1 %vm247_vm2, %v283_v5 }
  0x9e   : > { %v278_v7 = vpop.f32.mrf.mxu0 }
  0x9f   : > { %v309_v8 = vpop.f32.mrf.mxu1 }
  0xa0   : > { %v312_v9 = vadd.f32 %v309_v8, %v278_v7 }
  0xa2   : > { %v319_v10 = vadd.f32 %v497_v6, %v312_v9 }
  0xa4   : > { %320 = vst [vmem:[%s231_s7] sm:$0xff] %v319_v10 }
  0xa5   : > { %525 = shalt.err (!%p522_p5)
}
  0xa6   : > { %442 = dma.vmem_to_hbm [thread:$0]  (%p643_p4), %s336_s8, 128, %s338_s9, %s322_s18  }
  0xa7 PF: > { %p448_p6 = scmp.ge.s32.totalorder %s576_s20, 2  ;;  %s349_s21 = sand.u32 1, %s556_s15  }
  0xa8   : > { %s350_s26 = scalar_lea.sflag [#allocation5], %s349_s21 }
  0xa9   : > { %p445_p7 = pnand %p448_p6, %p650_p8 }
  0xab   : > { %p446_p9 = pneg %p445_p7 }
  0xad   : > { %551 = dma.done.wait (%p446_p9), %s350_s26, 128  }
  0xae   : > { %553 = vsyncadd (%p446_p9), %s350_s26, 4294967168  ;;  %s17_s20 = sadd.s32 1, %s576_s20   ;;  %s719_s15 = smov %s560_s16 }
  0xaf   : > { %p14_p10 = scmp.ge.s32.totalorder %s17_s20, 4   ;;  %s720_s16 = smov %s564_s17 }
  0xb0   : > { %s721_s17 = smov %s656_s28  ;;  %s722_s18 = smov %s572_s19 }
  0xb1   : > { %s723_s19 = smov %s725_s23  ;;  %16 = sbr.rel (!%p14_p10) target bundleno = 4 (0x4), region = 75 }
  0xb6   :  { %356 = vsyncpa [#allocation5], 1 }
  0xb7   :  { %358 = vsyncpa [#allocation5 + $0x1], 1 }

</bundles_post_ra>
